<compile_context>
chip_gen: v7x
topology: tpu7x:2x2x1
jax: 0.10.0
libtpu: 0.0.40
codegen_flags: <defaults>
</compile_context>

<pallas_src>
from functools import partial

import jax
import jax.numpy as jnp
import numpy as np
from jax.experimental import pallas as pl
from jax.experimental.pallas import tpu as pltpu

NEG_SLOPE = 0.01  # torch.nn.LeakyReLU() default negative_slope


def _round_up(x, m):
    return (x + m - 1) // m * m


def _fused_kernel(x_ref, w_ref, b_ref, out_ref, xpad_ref, col_ref, *,
                  H, W, Wx, Lq, La_pad, C, Cp, min_value, max_value):
    """One batch image per grid step.

    x_ref   : (1, C, H*W)     raw image, rows flattened onto the lane axis (stride W)
    w_ref   : (Cout, 9*Cp)    im2col weight matrix, column index = k*Cp + c
    b_ref   : (Cout, 1)
    out_ref : (1, Cout, La_pad)  wrapped conv output (row stride Wx, lane-dense)
    xpad_ref: (Cp, Lq)        VMEM scratch: 2-px zero-padded input, row stride Wx
    col_ref : (9*Cp, La_pad)  VMEM scratch: im2col-stacked pooled taps
    """
    # ---- Stage 1: build the zero-padded plane in VMEM (no padded copy in HBM). ----
    # Zero every step (NOT only on step 0: with megacore each core owns its scratch).
    xpad_ref[...] = jnp.zeros_like(xpad_ref)
    for h in range(H):  # paste input row h at (row h+2, col 2) of the padded plane
        dst = (h + 2) * Wx + 2
        xpad_ref[0:C, dst:dst + W] = x_ref[0, :, h * W:(h + 1) * W]

    xp = xpad_ref[...]  # (Cp, Lq); channels C..Cp-1 and all pad/slack lanes are zero

    # shifted(v, d)[i] == v[i + d]  (pltpu.roll ~ jnp.roll; positive amount Lq - d).
    # Circular wrap-around only lands in the slack region, never read for kept data.
    def shifted(v, d):
        return pltpu.roll(v, Lq - d, axis=1) if d else v

    # ---- Stage 2: AvgPool2d(2, stride=1) over the padded plane == pooled + conv pad
    pooled = (xp + shifted(xp, 1) + shifted(xp, Wx) + shifted(xp, Wx + 1)) * 0.25

    # ---- Stage 3: im2col along sublanes: row k*Cp + c  <-  pooled[c, . + kh*Wx + kw]
    for k in range(9):
        kh, kw = divmod(k, 3)
        col_ref[k * Cp:(k + 1) * Cp, :] = shifted(pooled, kh * Wx + kw)[:, :La_pad]

    # ---- Stage 4: single (Cout, 72) @ (72, La_pad) MXU matmul + bias ----
    acc = jnp.dot(w_ref[...], col_ref[...], preferred_element_type=jnp.float32)
    acc = acc + b_ref[...]

    # ---- Stage 5: clamp_min / clamp_max (+ LeakyReLU, dead code when min >= 0) ----
    v = jnp.minimum(jnp.maximum(acc, min_value), max_value)
    if min_value < 0:
        v = jnp.where(v >= 0, v, NEG_SLOPE * v)
    out_ref[0] = v


def model_forward(x_nchw, weight, bias, min_value=0.0, max_value=6.4):
    x = x_nchw.astype(jnp.float32)
    N, C, H, W = x.shape
    Cin, Cout, KH, KW = weight.shape   # ConvTranspose2d weight: (in, out, kh, kw)
    assert (Cin, KH, KW) == (C, 3, 3)

    Ho, Wo = H + 1, W + 1              # AvgPool2d(2, stride=1, pad=1) output size
    Wx = W + 4                         # 2-px padded row stride (wrap-trick layout)
    Lx = (H + 4) * Wx                  # flattened padded-plane length
    La = Ho * Wx                       # valid wrapped conv-output length
    La_pad = _round_up(La, 128)        # lane-dense output rows (unmasked stores)
    # Padded-plane scratch width: holds the whole plane and every shifted read for
    # the La_pad computed lanes stays in-bounds; rounded to 128 for clean layout.
    Lq = _round_up(max(Lx, La_pad + 2 * Wx + 2), 128)
    Cp = 8                             # channels padded to one sublane group

    # Raw input, only reshaped (free): all padding happens inside the kernel.
    xf = x.reshape(N, C, H * W)

    # ConvTranspose2d(stride=1, padding=1) == 3x3 same-padding correlation with the
    # spatially flipped kernel:  Wc[co, ci, kh, kw] = weight[ci, co, 2-kh, 2-kw].
    # Pack as the im2col weight matrix  W2[co, k*Cp + ci],  k = kh*3 + kw.
    wf = weight[:, :, ::-1, ::-1].astype(jnp.float32)      # (Cin, Cout, 3, 3)
    w3 = jnp.transpose(wf, (2, 3, 1, 0))                   # (kh, kw, Cout, Cin)
    w3 = jnp.pad(w3, ((0, 0), (0, 0), (0, 0), (0, Cp - C)))
    w2 = jnp.transpose(w3.reshape(9, Cout, Cp), (1, 0, 2)).reshape(Cout, 9 * Cp)
    b2 = bias.astype(jnp.float32).reshape(Cout, 1)

    # NOTE: scratch is sized for one whole plane per grid step; for large H, W
    # (e.g. the 224x224 spec shape on v7x's 64 MiB VMEM) this should be re-tiled
    # over row blocks.  Fine for the small shapes exercised here.
    out_w = pl.pallas_call(
        partial(_fused_kernel, H=H, W=W, Wx=Wx, Lq=Lq, La_pad=La_pad,
                C=C, Cp=Cp, min_value=float(min_value), max_value=float(max_value)),
        out_shape=jax.ShapeDtypeStruct((N, Cout, La_pad), jnp.float32),
        grid=(N,),
        in_specs=[
            pl.BlockSpec((1, C, H * W), lambda n: (n, 0, 0)),
            pl.BlockSpec((Cout, 9 * Cp), lambda n: (0, 0)),
            pl.BlockSpec((Cout, 1), lambda n: (0, 0)),
        ],
        out_specs=pl.BlockSpec((1, Cout, La_pad), lambda n: (n, 0, 0)),
        scratch_shapes=[pltpu.VMEM((Cp, Lq), jnp.float32),
                        pltpu.VMEM((9 * Cp, La_pad), jnp.float32)],
        compiler_params=pltpu.CompilerParams(dimension_semantics=("parallel",)),
    )(xf, w2, b2)

    # Un-wrap: keep the valid La lanes, reshape to rows, drop wrap-junk columns.
    return out_w[:, :, :La].reshape(N, Cout, Ho, Wx)[:, :, :, :Wo]


def ref_forward(x_nchw, weight, bias, min_value=0.0, max_value=6.4):
    """Pure-JAX reference for correctness checking."""
    x = x_nchw.astype(jnp.float32)
    xp = jnp.pad(x, ((0, 0), (0, 0), (1, 1), (1, 1)))
    pooled = (xp[:, :, :-1, :-1] + xp[:, :, 1:, :-1]
              + xp[:, :, :-1, 1:] + xp[:, :, 1:, 1:]) * 0.25
    w_oihw = jnp.transpose(weight[:, :, ::-1, ::-1], (1, 0, 2, 3))
    y = jax.lax.conv_general_dilated(
        pooled, w_oihw, window_strides=(1, 1), padding=((1, 1), (1, 1)),
        dimension_numbers=('NCHW', 'OIHW', 'NCHW'),
        precision=jax.lax.Precision.HIGHEST)
    y = y + bias[None, :, None, None]
    y = jnp.clip(y, min_value, max_value)
    return jnp.where(y >= 0, y, NEG_SLOPE * y)


if __name__ == "__main__":
    key = jax.random.PRNGKey(0)
    kx, kw, kb = jax.random.split(key, 3)

    # Small shapes consistent with the module (in_channels must be 3).
    N, C, H, W = 2, 3, 16, 16
    x = jax.random.normal(kx, (N, C, H, W), dtype=jnp.float32)

    # Deterministic synthetic parameters for ConvTranspose2d(3, 8, 3):
    #   weight (in=3, out=8, 3, 3), bias (8,)
    weight = jax.random.normal(kw, (3, 8, 3, 3), dtype=jnp.float32) * 0.2
    bias = jax.random.normal(kb, (8,), dtype=jnp.float32) * 0.1

    out = model_forward(x, weight, bias)
    out = jax.block_until_ready(out)

    assert out.shape == (N, 8, H + 1, W + 1), out.shape
    ref = ref_forward(x, weight, bias)
    np.testing.assert_allclose(np.asarray(out), np.asarray(ref),
                               rtol=1e-4, atol=1e-4)
    print("KERNEL_OK")
</pallas_src>

<mosaic_0001>
module attributes {stable_mosaic.version = 11 : i64} {
  func.func @_fused_kernel(%arg0: i32, %arg1: memref<1x3x256xf32, #tpu.memory_space<vmem>>, %arg2: memref<8x72xf32, #tpu.memory_space<vmem>>, %arg3: memref<8x1xf32, #tpu.memory_space<vmem>>, %arg4: memref<1x8x384xf32, #tpu.memory_space<vmem>>, %arg5: memref<8x512xf32, #tpu.memory_space<vmem>>, %arg6: memref<72x384xf32, #tpu.memory_space<vmem>>) attributes {dimension_semantics = [#tpu.dimension_semantics<parallel>], iteration_bounds = array<i64: 2>, scalar_prefetch = 0 : i64, scratch_operands = 2 : i64, tpu.core_type = #tpu.core_type<tc>, window_params = [{transform_indices = @transform_0, window_bounds = array<i64: 1, 3, 256>}, {pipeline_mode = #tpu.pipeline_mode<synchronous>, transform_indices = @transform_1, window_bounds = array<i64: 8, 72>}, {pipeline_mode = #tpu.pipeline_mode<synchronous>, transform_indices = @transform_2, window_bounds = array<i64: 8, 1>}, {transform_indices = @transform_3, window_bounds = array<i64: 1, 8, 384>}]} {
    %cst = arith.constant 0.000000e+00 : f32
    %0 = vector.broadcast %cst : f32 to vector<8x512xf32>
    %c0 = arith.constant 0 : index
    %c0_0 = arith.constant 0 : index
    %1 = vector.load %arg5[%c0, %c0_0] : memref<8x512xf32, #tpu.memory_space<vmem>>, vector<8x512xf32>
    tpu.vector_store %arg5[%c0, %c0_0], %0 {strides = array<i32>} : memref<8x512xf32, #tpu.memory_space<vmem>>, vector<8x512xf32>,
    %c0_1 = arith.constant 0 : index
    %c0_2 = arith.constant 0 : index
    %c0_3 = arith.constant 0 : index
    %2 = vector.load %arg1[%c0_1, %c0_2, %c0_3] : memref<1x3x256xf32, #tpu.memory_space<vmem>>, vector<1x3x16xf32>
    %3 = vector.shape_cast %2 : vector<1x3x16xf32> to vector<3x16xf32>
    %c0_4 = arith.constant 0 : index
    %c42 = arith.constant 42 : index
    %4 = vector.load %arg5[%c0_4, %c42] : memref<8x512xf32, #tpu.memory_space<vmem>>, vector<3x16xf32>
    tpu.vector_store %arg5[%c0_4, %c42], %3 {strides = array<i32>} : memref<8x512xf32, #tpu.memory_space<vmem>>, vector<3x16xf32>,
    %c0_5 = arith.constant 0 : index
    %c0_6 = arith.constant 0 : index
    %c16 = arith.constant 16 : index
    %5 = vector.load %arg1[%c0_5, %c0_6, %c16] : memref<1x3x256xf32, #tpu.memory_space<vmem>>, vector<1x3x16xf32>
    %6 = vector.shape_cast %5 : vector<1x3x16xf32> to vector<3x16xf32>
    %c0_7 = arith.constant 0 : index
    %c62 = arith.constant 62 : index
    %7 = vector.load %arg5[%c0_7, %c62] : memref<8x512xf32, #tpu.memory_space<vmem>>, vector<3x16xf32>
    tpu.vector_store %arg5[%c0_7, %c62], %6 {strides = array<i32>} : memref<8x512xf32, #tpu.memory_space<vmem>>, vector<3x16xf32>,
    %c0_8 = arith.constant 0 : index
    %c0_9 = arith.constant 0 : index
    %c32 = arith.constant 32 : index
    %8 = vector.load %arg1[%c0_8, %c0_9, %c32] : memref<1x3x256xf32, #tpu.memory_space<vmem>>, vector<1x3x16xf32>
    %9 = vector.shape_cast %8 : vector<1x3x16xf32> to vector<3x16xf32>
    %c0_10 = arith.constant 0 : index
    %c82 = arith.constant 82 : index
    %10 = vector.load %arg5[%c0_10, %c82] : memref<8x512xf32, #tpu.memory_space<vmem>>, vector<3x16xf32>
    tpu.vector_store %arg5[%c0_10, %c82], %9 {strides = array<i32>} : memref<8x512xf32, #tpu.memory_space<vmem>>, vector<3x16xf32>,
    %c0_11 = arith.constant 0 : index
    %c0_12 = arith.constant 0 : index
    %c48 = arith.constant 48 : index
    %11 = vector.load %arg1[%c0_11, %c0_12, %c48] : memref<1x3x256xf32, #tpu.memory_space<vmem>>, vector<1x3x16xf32>
    %12 = vector.shape_cast %11 : vector<1x3x16xf32> to vector<3x16xf32>
    %c0_13 = arith.constant 0 : index
    %c102 = arith.constant 102 : index
    %13 = vector.load %arg5[%c0_13, %c102] : memref<8x512xf32, #tpu.memory_space<vmem>>, vector<3x16xf32>
    tpu.vector_store %arg5[%c0_13, %c102], %12 {strides = array<i32>} : memref<8x512xf32, #tpu.memory_space<vmem>>, vector<3x16xf32>,
    %c0_14 = arith.constant 0 : index
    %c0_15 = arith.constant 0 : index
    %c64 = arith.constant 64 : index
    %14 = vector.load %arg1[%c0_14, %c0_15, %c64] : memref<1x3x256xf32, #tpu.memory_space<vmem>>, vector<1x3x16xf32>
    %15 = vector.shape_cast %14 : vector<1x3x16xf32> to vector<3x16xf32>
    %c0_16 = arith.constant 0 : index
    %c122 = arith.constant 122 : index
    %16 = vector.load %arg5[%c0_16, %c122] : memref<8x512xf32, #tpu.memory_space<vmem>>, vector<3x16xf32>
    tpu.vector_store %arg5[%c0_16, %c122], %15 {strides = array<i32>} : memref<8x512xf32, #tpu.memory_space<vmem>>, vector<3x16xf32>,
    %c0_17 = arith.constant 0 : index
    %c0_18 = arith.constant 0 : index
    %c80 = arith.constant 80 : index
    %17 = vector.load %arg1[%c0_17, %c0_18, %c80] : memref<1x3x256xf32, #tpu.memory_space<vmem>>, vector<1x3x16xf32>
    %18 = vector.shape_cast %17 : vector<1x3x16xf32> to vector<3x16xf32>
    %c0_19 = arith.constant 0 : index
    %c142 = arith.constant 142 : index
    %19 = vector.load %arg5[%c0_19, %c142] : memref<8x512xf32, #tpu.memory_space<vmem>>, vector<3x16xf32>
    tpu.vector_store %arg5[%c0_19, %c142], %18 {strides = array<i32>} : memref<8x512xf32, #tpu.memory_space<vmem>>, vector<3x16xf32>,
    %c0_20 = arith.constant 0 : index
    %c0_21 = arith.constant 0 : index
    %c96 = arith.constant 96 : index
    %20 = vector.load %arg1[%c0_20, %c0_21, %c96] : memref<1x3x256xf32, #tpu.memory_space<vmem>>, vector<1x3x16xf32>
    %21 = vector.shape_cast %20 : vector<1x3x16xf32> to vector<3x16xf32>
    %c0_22 = arith.constant 0 : index
    %c162 = arith.constant 162 : index
    %22 = vector.load %arg5[%c0_22, %c162] : memref<8x512xf32, #tpu.memory_space<vmem>>, vector<3x16xf32>
    tpu.vector_store %arg5[%c0_22, %c162], %21 {strides = array<i32>} : memref<8x512xf32, #tpu.memory_space<vmem>>, vector<3x16xf32>,
    %c0_23 = arith.constant 0 : index
    %c0_24 = arith.constant 0 : index
    %c112 = arith.constant 112 : index
    %23 = vector.load %arg1[%c0_23, %c0_24, %c112] : memref<1x3x256xf32, #tpu.memory_space<vmem>>, vector<1x3x16xf32>
    %24 = vector.shape_cast %23 : vector<1x3x16xf32> to vector<3x16xf32>
    %c0_25 = arith.constant 0 : index
    %c182 = arith.constant 182 : index
    %25 = vector.load %arg5[%c0_25, %c182] : memref<8x512xf32, #tpu.memory_space<vmem>>, vector<3x16xf32>
    tpu.vector_store %arg5[%c0_25, %c182], %24 {strides = array<i32>} : memref<8x512xf32, #tpu.memory_space<vmem>>, vector<3x16xf32>,
    %c0_26 = arith.constant 0 : index
    %c0_27 = arith.constant 0 : index
    %c128 = arith.constant 128 : index
    %26 = vector.load %arg1[%c0_26, %c0_27, %c128] : memref<1x3x256xf32, #tpu.memory_space<vmem>>, vector<1x3x16xf32>
    %27 = vector.shape_cast %26 : vector<1x3x16xf32> to vector<3x16xf32>
    %c0_28 = arith.constant 0 : index
    %c202 = arith.constant 202 : index
    %28 = vector.load %arg5[%c0_28, %c202] : memref<8x512xf32, #tpu.memory_space<vmem>>, vector<3x16xf32>
    tpu.vector_store %arg5[%c0_28, %c202], %27 {strides = array<i32>} : memref<8x512xf32, #tpu.memory_space<vmem>>, vector<3x16xf32>,
    %c0_29 = arith.constant 0 : index
    %c0_30 = arith.constant 0 : index
    %c144 = arith.constant 144 : index
    %29 = vector.load %arg1[%c0_29, %c0_30, %c144] : memref<1x3x256xf32, #tpu.memory_space<vmem>>, vector<1x3x16xf32>
    %30 = vector.shape_cast %29 : vector<1x3x16xf32> to vector<3x16xf32>
    %c0_31 = arith.constant 0 : index
    %c222 = arith.constant 222 : index
    %31 = vector.load %arg5[%c0_31, %c222] : memref<8x512xf32, #tpu.memory_space<vmem>>, vector<3x16xf32>
    tpu.vector_store %arg5[%c0_31, %c222], %30 {strides = array<i32>} : memref<8x512xf32, #tpu.memory_space<vmem>>, vector<3x16xf32>,
    %c0_32 = arith.constant 0 : index
    %c0_33 = arith.constant 0 : index
    %c160 = arith.constant 160 : index
    %32 = vector.load %arg1[%c0_32, %c0_33, %c160] : memref<1x3x256xf32, #tpu.memory_space<vmem>>, vector<1x3x16xf32>
    %33 = vector.shape_cast %32 : vector<1x3x16xf32> to vector<3x16xf32>
    %c0_34 = arith.constant 0 : index
    %c242 = arith.constant 242 : index
    %34 = vector.load %arg5[%c0_34, %c242] : memref<8x512xf32, #tpu.memory_space<vmem>>, vector<3x16xf32>
    tpu.vector_store %arg5[%c0_34, %c242], %33 {strides = array<i32>} : memref<8x512xf32, #tpu.memory_space<vmem>>, vector<3x16xf32>,
    %c0_35 = arith.constant 0 : index
    %c0_36 = arith.constant 0 : index
    %c176 = arith.constant 176 : index
    %35 = vector.load %arg1[%c0_35, %c0_36, %c176] : memref<1x3x256xf32, #tpu.memory_space<vmem>>, vector<1x3x16xf32>
    %36 = vector.shape_cast %35 : vector<1x3x16xf32> to vector<3x16xf32>
    %c0_37 = arith.constant 0 : index
    %c262 = arith.constant 262 : index
    %37 = vector.load %arg5[%c0_37, %c262] : memref<8x512xf32, #tpu.memory_space<vmem>>, vector<3x16xf32>
    tpu.vector_store %arg5[%c0_37, %c262], %36 {strides = array<i32>} : memref<8x512xf32, #tpu.memory_space<vmem>>, vector<3x16xf32>,
    %c0_38 = arith.constant 0 : index
    %c0_39 = arith.constant 0 : index
    %c192 = arith.constant 192 : index
    %38 = vector.load %arg1[%c0_38, %c0_39, %c192] : memref<1x3x256xf32, #tpu.memory_space<vmem>>, vector<1x3x16xf32>
    %39 = vector.shape_cast %38 : vector<1x3x16xf32> to vector<3x16xf32>
    %c0_40 = arith.constant 0 : index
    %c282 = arith.constant 282 : index
    %40 = vector.load %arg5[%c0_40, %c282] : memref<8x512xf32, #tpu.memory_space<vmem>>, vector<3x16xf32>
    tpu.vector_store %arg5[%c0_40, %c282], %39 {strides = array<i32>} : memref<8x512xf32, #tpu.memory_space<vmem>>, vector<3x16xf32>,
    %c0_41 = arith.constant 0 : index
    %c0_42 = arith.constant 0 : index
    %c208 = arith.constant 208 : index
    %41 = vector.load %arg1[%c0_41, %c0_42, %c208] : memref<1x3x256xf32, #tpu.memory_space<vmem>>, vector<1x3x16xf32>
    %42 = vector.shape_cast %41 : vector<1x3x16xf32> to vector<3x16xf32>
    %c0_43 = arith.constant 0 : index
    %c302 = arith.constant 302 : index
    %43 = vector.load %arg5[%c0_43, %c302] : memref<8x512xf32, #tpu.memory_space<vmem>>, vector<3x16xf32>
    tpu.vector_store %arg5[%c0_43, %c302], %42 {strides = array<i32>} : memref<8x512xf32, #tpu.memory_space<vmem>>, vector<3x16xf32>,
    %c0_44 = arith.constant 0 : index
    %c0_45 = arith.constant 0 : index
    %c224 = arith.constant 224 : index
    %44 = vector.load %arg1[%c0_44, %c0_45, %c224] : memref<1x3x256xf32, #tpu.memory_space<vmem>>, vector<1x3x16xf32>
    %45 = vector.shape_cast %44 : vector<1x3x16xf32> to vector<3x16xf32>
    %c0_46 = arith.constant 0 : index
    %c322 = arith.constant 322 : index
    %46 = vector.load %arg5[%c0_46, %c322] : memref<8x512xf32, #tpu.memory_space<vmem>>, vector<3x16xf32>
    tpu.vector_store %arg5[%c0_46, %c322], %45 {strides = array<i32>} : memref<8x512xf32, #tpu.memory_space<vmem>>, vector<3x16xf32>,
    %c0_47 = arith.constant 0 : index
    %c0_48 = arith.constant 0 : index
    %c240 = arith.constant 240 : index
    %47 = vector.load %arg1[%c0_47, %c0_48, %c240] : memref<1x3x256xf32, #tpu.memory_space<vmem>>, vector<1x3x16xf32>
    %48 = vector.shape_cast %47 : vector<1x3x16xf32> to vector<3x16xf32>
    %c0_49 = arith.constant 0 : index
    %c342 = arith.constant 342 : index
    %49 = vector.load %arg5[%c0_49, %c342] : memref<8x512xf32, #tpu.memory_space<vmem>>, vector<3x16xf32>
    tpu.vector_store %arg5[%c0_49, %c342], %48 {strides = array<i32>} : memref<8x512xf32, #tpu.memory_space<vmem>>, vector<3x16xf32>,
    %c0_50 = arith.constant 0 : index
    %c0_51 = arith.constant 0 : index
    %50 = vector.load %arg5[%c0_50, %c0_51] : memref<8x512xf32, #tpu.memory_space<vmem>>, vector<8x512xf32>
    %c511_i32 = arith.constant 511 : i32
    %51 = tpu.dynamic_rotate %50 by %c511_i32 dim 1 : vector<8x512xf32>, i32 -> vector<8x512xf32>
    %52 = arith.addf %50, %51 : vector<8x512xf32>
    %c492_i32 = arith.constant 492 : i32
    %53 = tpu.dynamic_rotate %50 by %c492_i32 dim 1 : vector<8x512xf32>, i32 -> vector<8x512xf32>
    %54 = arith.addf %52, %53 : vector<8x512xf32>
    %c491_i32 = arith.constant 491 : i32
    %55 = tpu.dynamic_rotate %50 by %c491_i32 dim 1 : vector<8x512xf32>, i32 -> vector<8x512xf32>
    %56 = arith.addf %54, %55 : vector<8x512xf32>
    %cst_52 = arith.constant 2.500000e-01 : f32
    %57 = vector.broadcast %cst_52 : f32 to vector<8x512xf32>
    %58 = arith.mulf %56, %57 : vector<8x512xf32>
    %59 = vector.extract_strided_slice %58 {offsets = [0, 0], sizes = [8, 384], strides = [1, 1]} : vector<8x512xf32> to vector<8x384xf32>
    %c0_53 = arith.constant 0 : index
    %c0_54 = arith.constant 0 : index
    %60 = vector.load %arg6[%c0_53, %c0_54] : memref<72x384xf32, #tpu.memory_space<vmem>>, vector<8x384xf32>
    tpu.vector_store %arg6[%c0_53, %c0_54], %59 {strides = array<i32>} : memref<72x384xf32, #tpu.memory_space<vmem>>, vector<8x384xf32>,
    %c511_i32_55 = arith.constant 511 : i32
    %61 = tpu.dynamic_rotate %58 by %c511_i32_55 dim 1 : vector<8x512xf32>, i32 -> vector<8x512xf32>
    %62 = vector.extract_strided_slice %61 {offsets = [0, 0], sizes = [8, 384], strides = [1, 1]} : vector<8x512xf32> to vector<8x384xf32>
    %c8 = arith.constant 8 : index
    %c0_56 = arith.constant 0 : index
    %63 = vector.load %arg6[%c8, %c0_56] : memref<72x384xf32, #tpu.memory_space<vmem>>, vector<8x384xf32>
    tpu.vector_store %arg6[%c8, %c0_56], %62 {strides = array<i32>} : memref<72x384xf32, #tpu.memory_space<vmem>>, vector<8x384xf32>,
    %c510_i32 = arith.constant 510 : i32
    %64 = tpu.dynamic_rotate %58 by %c510_i32 dim 1 : vector<8x512xf32>, i32 -> vector<8x512xf32>
    %65 = vector.extract_strided_slice %64 {offsets = [0, 0], sizes = [8, 384], strides = [1, 1]} : vector<8x512xf32> to vector<8x384xf32>
    %c16_57 = arith.constant 16 : index
    %c0_58 = arith.constant 0 : index
    %66 = vector.load %arg6[%c16_57, %c0_58] : memref<72x384xf32, #tpu.memory_space<vmem>>, vector<8x384xf32>
    tpu.vector_store %arg6[%c16_57, %c0_58], %65 {strides = array<i32>} : memref<72x384xf32, #tpu.memory_space<vmem>>, vector<8x384xf32>,
    %c492_i32_59 = arith.constant 492 : i32
    %67 = tpu.dynamic_rotate %58 by %c492_i32_59 dim 1 : vector<8x512xf32>, i32 -> vector<8x512xf32>
    %68 = vector.extract_strided_slice %67 {offsets = [0, 0], sizes = [8, 384], strides = [1, 1]} : vector<8x512xf32> to vector<8x384xf32>
    %c24 = arith.constant 24 : index
    %c0_60 = arith.constant 0 : index
    %69 = vector.load %arg6[%c24, %c0_60] : memref<72x384xf32, #tpu.memory_space<vmem>>, vector<8x384xf32>
    tpu.vector_store %arg6[%c24, %c0_60], %68 {strides = array<i32>} : memref<72x384xf32, #tpu.memory_space<vmem>>, vector<8x384xf32>,
    %c491_i32_61 = arith.constant 491 : i32
    %70 = tpu.dynamic_rotate %58 by %c491_i32_61 dim 1 : vector<8x512xf32>, i32 -> vector<8x512xf32>
    %71 = vector.extract_strided_slice %70 {offsets = [0, 0], sizes = [8, 384], strides = [1, 1]} : vector<8x512xf32> to vector<8x384xf32>
    %c32_62 = arith.constant 32 : index
    %c0_63 = arith.constant 0 : index
    %72 = vector.load %arg6[%c32_62, %c0_63] : memref<72x384xf32, #tpu.memory_space<vmem>>, vector<8x384xf32>
    tpu.vector_store %arg6[%c32_62, %c0_63], %71 {strides = array<i32>} : memref<72x384xf32, #tpu.memory_space<vmem>>, vector<8x384xf32>,
    %c490_i32 = arith.constant 490 : i32
    %73 = tpu.dynamic_rotate %58 by %c490_i32 dim 1 : vector<8x512xf32>, i32 -> vector<8x512xf32>
    %74 = vector.extract_strided_slice %73 {offsets = [0, 0], sizes = [8, 384], strides = [1, 1]} : vector<8x512xf32> to vector<8x384xf32>
    %c40 = arith.constant 40 : index
    %c0_64 = arith.constant 0 : index
    %75 = vector.load %arg6[%c40, %c0_64] : memref<72x384xf32, #tpu.memory_space<vmem>>, vector<8x384xf32>
    tpu.vector_store %arg6[%c40, %c0_64], %74 {strides = array<i32>} : memref<72x384xf32, #tpu.memory_space<vmem>>, vector<8x384xf32>,
    %c472_i32 = arith.constant 472 : i32
    %76 = tpu.dynamic_rotate %58 by %c472_i32 dim 1 : vector<8x512xf32>, i32 -> vector<8x512xf32>
    %77 = vector.extract_strided_slice %76 {offsets = [0, 0], sizes = [8, 384], strides = [1, 1]} : vector<8x512xf32> to vector<8x384xf32>
    %c48_65 = arith.constant 48 : index
    %c0_66 = arith.constant 0 : index
    %78 = vector.load %arg6[%c48_65, %c0_66] : memref<72x384xf32, #tpu.memory_space<vmem>>, vector<8x384xf32>
    tpu.vector_store %arg6[%c48_65, %c0_66], %77 {strides = array<i32>} : memref<72x384xf32, #tpu.memory_space<vmem>>, vector<8x384xf32>,
    %c471_i32 = arith.constant 471 : i32
    %79 = tpu.dynamic_rotate %58 by %c471_i32 dim 1 : vector<8x512xf32>, i32 -> vector<8x512xf32>
    %80 = vector.extract_strided_slice %79 {offsets = [0, 0], sizes = [8, 384], strides = [1, 1]} : vector<8x512xf32> to vector<8x384xf32>
    %c56 = arith.constant 56 : index
    %c0_67 = arith.constant 0 : index
    %81 = vector.load %arg6[%c56, %c0_67] : memref<72x384xf32, #tpu.memory_space<vmem>>, vector<8x384xf32>
    tpu.vector_store %arg6[%c56, %c0_67], %80 {strides = array<i32>} : memref<72x384xf32, #tpu.memory_space<vmem>>, vector<8x384xf32>,
    %c470_i32 = arith.constant 470 : i32
    %82 = tpu.dynamic_rotate %58 by %c470_i32 dim 1 : vector<8x512xf32>, i32 -> vector<8x512xf32>
    %83 = vector.extract_strided_slice %82 {offsets = [0, 0], sizes = [8, 384], strides = [1, 1]} : vector<8x512xf32> to vector<8x384xf32>
    %c64_68 = arith.constant 64 : index
    %c0_69 = arith.constant 0 : index
    %84 = vector.load %arg6[%c64_68, %c0_69] : memref<72x384xf32, #tpu.memory_space<vmem>>, vector<8x384xf32>
    tpu.vector_store %arg6[%c64_68, %c0_69], %83 {strides = array<i32>} : memref<72x384xf32, #tpu.memory_space<vmem>>, vector<8x384xf32>,
    %c0_70 = arith.constant 0 : index
    %c0_71 = arith.constant 0 : index
    %85 = vector.load %arg2[%c0_70, %c0_71] : memref<8x72xf32, #tpu.memory_space<vmem>>, vector<8x72xf32>
    %c0_72 = arith.constant 0 : index
    %c0_73 = arith.constant 0 : index
    %86 = vector.load %arg6[%c0_72, %c0_73] : memref<72x384xf32, #tpu.memory_space<vmem>>, vector<72x384xf32>
    %cst_74 = arith.constant dense<0.000000e+00> : vector<8x384xf32>
    %87 = tpu.matmul %85, %86, %cst_74 {dimension_numbers = #tpu.dot_dimension_numbers<[1], [0], [0], [1], [0, 0, 1, 1], [], []>} : vector<8x72xf32>, vector<72x384xf32>, vector<8x384xf32> -> vector<8x384xf32>
    %c0_75 = arith.constant 0 : index
    %c0_76 = arith.constant 0 : index
    %88 = vector.load %arg3[%c0_75, %c0_76] : memref<8x1xf32, #tpu.memory_space<vmem>>, vector<8x1xf32>
    %89 = vector.broadcast %88 : vector<8x1xf32> to vector<8x384xf32>
    %90 = arith.addf %87, %89 : vector<8x384xf32>
    %cst_77 = arith.constant 0.000000e+00 : f32
    %91 = vector.broadcast %cst_77 : f32 to vector<8x384xf32>
    %92 = arith.maximumf %90, %91 : vector<8x384xf32>
    %cst_78 = arith.constant 6.400000e+00 : f32
    %93 = vector.broadcast %cst_78 : f32 to vector<8x384xf32>
    %94 = arith.minimumf %92, %93 : vector<8x384xf32>
    %c0_79 = arith.constant 0 : index
    %c0_80 = arith.constant 0 : index
    %c0_81 = arith.constant 0 : index
    %95 = vector.load %arg4[%c0_79, %c0_80, %c0_81] : memref<1x8x384xf32, #tpu.memory_space<vmem>>, vector<1x8x384xf32>
    %96 = vector.shape_cast %95 : vector<1x8x384xf32> to vector<8x384xf32>
    %97 = vector.shape_cast %94 : vector<8x384xf32> to vector<1x8x384xf32>
    tpu.vector_store %arg4[%c0_79, %c0_80, %c0_81], %97 {strides = array<i32>} : memref<1x8x384xf32, #tpu.memory_space<vmem>>, vector<1x8x384xf32>,
    return
  }
  func.func @transform_0(%arg0: i32) -> (i32, i32, i32) {
    %c0_i32 = arith.constant 0 : i32
    %c0_i32_0 = arith.constant 0 : i32
    %c0_i32_1 = arith.constant 0 : i32
    return %arg0, %c0_i32, %c0_i32_0 : i32, i32, i32
  }
  func.func @transform_1(%arg0: i32) -> (i32, i32) {
    %c0_i32 = arith.constant 0 : i32
    %c0_i32_0 = arith.constant 0 : i32
    %c0_i32_1 = arith.constant 0 : i32
    return %c0_i32, %c0_i32_0 : i32, i32
  }
  func.func @transform_2(%arg0: i32) -> (i32, i32) {
    %c0_i32 = arith.constant 0 : i32
    %c0_i32_0 = arith.constant 0 : i32
    %c0_i32_1 = arith.constant 0 : i32
    return %c0_i32, %c0_i32_0 : i32, i32
  }
  func.func @transform_3(%arg0: i32) -> (i32, i32, i32) {
    %c0_i32 = arith.constant 0 : i32
    %c0_i32_0 = arith.constant 0 : i32
    %c0_i32_1 = arith.constant 0 : i32
    return %arg0, %c0_i32, %c0_i32_0 : i32, i32, i32
  }
}

</mosaic_0001>

<bundles_post_ra>
// kernel: tpu_custom_call.1
= control target key start
LH: loop header
LB: loop body
LE: loop exit
PB: predicated region body
PF: predicated region fallthrough
CT: control target
= control target key end

     0   :  { %8 = vsyncpa [#allocation5], 0  ;;  %s1296_s0 = inlined_call_operand.vmem [shape: f32[2,3,256], index: 0, kind: input, shape index: {}]   ;;  %s1297_s1 = inlined_call_operand.vmem [shape: f32[8,72], index: 1, kind: input, shape index: {}]   ;;  %s1298_s2 = inlined_call_operand.vmem [shape: f32[8,1], index: 2, kind: input, shape index: {}]   ;;  %s1299_s3 = inlined_call_operand.hbm [shape: f32[2,8,384], index: 3, kind: output, shape index: {}]  }
   0x1   :  { %10 = vsyncpa [#allocation5 + $0x1], 0  ;;  %s1054_s12 = smov 0   ;;  %s1056_s13 = smov 0  }
   0x2   :  { %s1058_s14 = smov 0   ;;  %s1060_s15 = smov 0  }
   0x3 LB: > { %s1075_s16 = sadd.s32 4294967295, %s1004_s15   ;;  %s732_s17 = sadd.s32 4294967294, %s1004_s15   ;;  %s1004_s15 = sphi %s1060_s15, %s1305_s15   ;;  %s1000_s14 = sphi %s1058_s14, %s1304_s14   ;;  %s996_s13 = sphi %s1056_s13, %s1303_s13   ;;  %s992_s12 = sphi %s1054_s12, %s1302_s12  }
   0x4   : > { %s1079_s18 = sadd.s32 1, %s1004_s15   ;;  %s91_s19 = sadd.s32 1, %s1000_s14 }
   0x5   : > { %s88_s20 = ssub.s32 %s1004_s15, %s1079_s18  ;;  %p101_p0 = scmp.ne.s32.totalorder %s1000_s14, %s996_s13 }
   0x6   : > { %p89_p1 = scmp.eq.s32.totalorder %s88_s20, 0  ;;  %p102_p2 = scmp.eq.s32.totalorder %s1075_s16, 1 }
   0x7   : > { %p107_p3 = scmp.ne.s32.totalorder %s996_s13, %s992_s12  ;;  %p108_p4 = scmp.eq.s32.totalorder %s732_s17, 1 }
   0x8   : > { %s1090_s21 = scalar_select %p89_p1, %s1000_s14, %s91_s19  }
   0x9   : > { %p1092_p5 = por %p102_p2, %p101_p0  ;;  %p1096_p6 = por %p108_p4, %p107_p3 }
   0xa   : > { %p735_p7 = scmp.ge.s32.totalorder %s1004_s15, 1  ;;  %p140_p8 = scmp.lt.s32.totalorder %s1004_s15, 3 }
   0xc   : > { %p141_p9 = pnand %p735_p7, %p140_p8 }
   0xd   : > { %p164_p10 = scmp.lt.s32.totalorder (!%p141_p9), %s1075_s16, 1  ;;  %v1006_v0 = vmov (!%p141_p9), 0.0   ;;  %s1007_s29 = smov (!%p141_p9), 58   ;;  %vm208_vm0 = vcmask (!%p141_p9), 75776   ;;  %vm252_vm1 = vcmask (!%p141_p9), 10240   ;;  %vm215_vm2 = vcmask (!%p141_p9), 239728  }
   0xe   : > { %144 = sbr.rel (%p141_p9) target bundleno = 703 (0x2bf), region = 32  ;;  %170 = vst [vmem:[#allocation2 + $0x8] sm:$0xff] (!%p141_p9), %v1006_v0  ;;  %169 = vst [vmem:[#allocation2] sm:$0xff] (!%p141_p9), %v1006_v0  ;;  %572 = vmatprep.mubr.f32.mxu0 (!%p141_p9), %v1006_v0  ;;  %s1008_s30 = smov (!%p141_p9), 82   ;;  %vm222_vm3 = vcmask (!%p141_p9), 403728   ;;  %vm259_vm4 = vcmask (!%p141_p9), 174128   ;;  %v301_v40 = vlaneseq (!%p141_p9) }
   0xf   : > { %171 = vst [vmem:[#allocation2 + $0x10] sm:$0xff] (!%p141_p9), %v1006_v0  ;;  %s1009_s4 = smov (!%p141_p9), 62   ;;  %s1010_s5 = smov (!%p141_p9), 66   ;;  %vm178_vm5 = vcmask (!%p141_p9), 469328   ;;  %vm229_vm6 = vcmask (!%p141_p9), 567728   ;;  %vm266_vm7 = vcmask (!%p141_p9), 338128  }
  0x10   : > { %s1011_s6 = smov (!%p141_p9), 86   ;;  %s1012_s7 = smov (!%p141_p9), 42   ;;  %vm185_vm8 = vcmask (!%p141_p9), 633328   ;;  %vm236_vm9 = vcmask (!%p141_p9), 731728   ;;  %vm273_vm10 = vcmask (!%p141_p9), 502128   ;;  %vm192_vm11 = vcmask (!%p141_p9), 797328  }
  0x11   : > { %s1013_s8 = smov (!%p141_p9), 70   ;;  %s1014_s9 = smov (!%p141_p9), 90   ;;  %vm243_vm12 = vcmask (!%p141_p9), 895728   ;;  %vm280_vm13 = vcmask (!%p141_p9), 666128   ;;  %vm250_vm14 = vcmask (!%p141_p9), 1043344   ;;  %vm199_vm15 = vcmask (!%p141_p9), 961328  }
  0x12   : > { %s1015_s10 = smov (!%p141_p9), 46   ;;  %s1016_s11 = smov (!%p141_p9), 74   ;;  %v1145_v43 = vand.u32 (!%p141_p9), 127, %v301_v40 }
  0x13   : > { %s1017_s17 = smov (!%p141_p9), 94   ;;  %s1018_s19 = smov (!%p141_p9), 50  }
  0x14   : > { %s1019_s20 = smov (!%p141_p9), 78   ;;  %s1022_s26 = smov (!%p141_p9), 102  }
  0x15   : > { %s165_s24 = scalar_select %p164_p10, %s1075_s16, 1 }
  0x16   : > { %s1023_s27 = smov 127  }
  0x17   : > { %s743_s25 = sshll.u32 %s165_s24, 3  ;;  %s1020_s24 = smov 98  }
  0x18   : > { %s1111_s28 = scalar_lea.vmem %s1296_s0, %s743_s25  ;;  %s1021_s25 = smov 54  }
  0x19   : > { %v201_v1 = vld [vmem:[%s1111_s28] sm:$0x7]  ;;  %v245_v2 = vld [vmem:[%s1111_s28 + $0x4] sm:$0x7] }
  0x1a   : > { %203 = vrot.lane.b32.xlu0 %v201_v1, %s1007_s29  ;;  %247 = vrot.lane.b32.xlu1 %v245_v2, %s1008_s30  ;;  %v210_v3 = vld [vmem:[%s1111_s28] sm:$0x7]  ;;  %v254_v5 = vld [vmem:[%s1111_s28 + $0x4] sm:$0x7]  ;;  %s1024_s29 = smov 108   ;;  %s1027_s30 = smov 126  }
  0x1b   : > { %v217_v4 = vld [vmem:[%s1111_s28] sm:$0x7]  ;;  %v261_v8 = vld [vmem:[%s1111_s28 + $0x4] sm:$0x7] }
  0x1c   : > { %v173_v6 = vld [vmem:[%s1111_s28] sm:$0x7]  ;;  %v231_v10 = vld [vmem:[%s1111_s28 + $0x4] sm:$0x7] }
  0x1d   : > { %v224_v7 = vld [vmem:[%s1111_s28] sm:$0x7]  ;;  %v268_v11 = vld [vmem:[%s1111_s28 + $0x4] sm:$0x7] }
  0x1e   : > { %212 = vrot.lane.b32.xlu0 %v210_v3, %s1009_s4  ;;  %219 = vrot.lane.b32.xlu1 %v217_v4, %s1010_s5  ;;  %v180_v9 = vld [vmem:[%s1111_s28] sm:$0x7]  ;;  %v238_v13 = vld [vmem:[%s1111_s28 + $0x4] sm:$0x7]  ;;  %v1026_v3 = vmov 0.0|0.0   ;;  %s1028_s4 = smov 106  }
  0x1f   : > { %v187_v12 = vld [vmem:[%s1111_s28] sm:$0x7]  ;;  %v275_v14 = vld [vmem:[%s1111_s28 + $0x4] sm:$0x7]  ;;  %791 = vmatprep.subr.bf16.mxu1 %v1026_v3  ;;  %s1029_s5 = smov 88  }
  0x20   : > { %v194_v15 = vld [vmem:[%s1111_s28] sm:$0x7]  ;;  %v282_v16 = vld [vmem:[%s1111_s28 + $0x4] sm:$0x7]  ;;  %s1025_s28 = smov 107  }
  0x22   : > { %256 = vrot.lane.b32.xlu0 %v254_v5, %s1011_s6  ;;  %175 = vrot.lane.b32.xlu1 %v173_v6, %s1012_s7  ;;  %s1030_s7 = smov 87  }
  0x26   : > { %226 = vrot.lane.b32.xlu0 %v224_v7, %s1013_s8  ;;  %263 = vrot.lane.b32.xlu1 %v261_v8, %s1014_s9 }
  0x2a   : > { %182 = vrot.lane.b32.xlu0 %v180_v9, %s1015_s10  ;;  %233 = vrot.lane.b32.xlu1 %v231_v10, %s1016_s11  ;;  %s161_s11 = sand.u32 1, %s996_s13  }
  0x2e   : > { %270 = vrot.lane.b32.xlu0 %v268_v11, %s1017_s17  ;;  %189 = vrot.lane.b32.xlu1 %v187_v12, %s1018_s19  ;;  %s803_s17 = smul.u32 24, %s161_s11 }
  0x2f   : > { %s804_s19 = smul.u32 384, %s1075_s16  ;;  %s659_s16 = scalar_lea.sflag [#allocation5], %s161_s11 }
  0x32   : > { %240 = vrot.lane.b32.xlu0 %v238_v13, %s1019_s20  ;;  %277 = vrot.lane.b32.xlu1 %v275_v14, %s1020_s24  ;;  %s163_s20 = scalar_lea.vmem [#allocation4], %s803_s17 }
  0x33   : > { %s673_s24 = sshll.u32 %s163_s20, 4  ;;  %s1256_s24 = int_to_ptr.vmem [resolvable:$true] %s673_s24 }
  0x36   : > { %196 = vrot.lane.b32.xlu0 %v194_v15, %s1021_s25  ;;  %284 = vrot.lane.b32.xlu1 %v282_v16, %s1022_s26 }
  0x3a   : > { %299 = vrot.lane.b32.xlu0 %v1006_v0, %s1023_s27 }
  0x3e   : > { %318 = vrot.lane.b32.xlu0 %v1006_v0, %s1024_s29 }
  0x8c   : > { %v204_v17 = vpop.permute.xlu0 %203  ;;  %v248_v18 = vpop.permute.xlu1 %247 }
  0x8d   : > { %209 = vst.msk [vmem:[#allocation2 + $0x8] sm:$0x7] %vm208_vm0, %v204_v17  ;;  %vm287_vm0 = vcmask 830128  }
  0x8e   : > { %253 = vst.msk [vmem:[#allocation2 + $0x10] sm:$0x7] %vm252_vm1, %v248_v18  ;;  %vm206_vm1 = vcmask 1043408  }
  0x90   : > { %v213_v19 = vpop.permute.xlu0 %212  ;;  %v220_v20 = vpop.permute.xlu1 %219 }
  0x91   : > { %216 = vst.msk [vmem:[#allocation2 + $0x8] sm:$0x7] %vm215_vm2, %v213_v19  ;;  %vm303_vm2 = vcmp.lt.s32.totalorder %v1145_v43, 127 }
  0x92   : > { %223 = vst.msk [vmem:[#allocation2 + $0x8] sm:$0x7] %vm222_vm3, %v220_v20  ;;  %vm320_vm3 = vcmp.lt.s32.totalorder %v1145_v43, 108 }
  0x94   : > { %v257_v21 = vpop.permute.xlu0 %256  ;;  %v176_v22 = vpop.permute.xlu1 %175 }
  0x95   : > { %260 = vst.msk [vmem:[#allocation2 + $0x10] sm:$0x7] %vm259_vm4, %v257_v21  ;;  %vm337_vm4 = vcmp.lt.s32.totalorder %v1145_v43, 107 }
  0x96   : > { %179 = vst.msk [vmem:[#allocation2] sm:$0x7] %vm178_vm5, %v176_v22  ;;  %vm1031_vm5 = vmmov 0  }
  0x97   : > { %772 = vmatprep.mubr.msk.f32.mxu1 %vm1031_vm5, %v1006_v0 }
  0x98   : > { %v227_v23 = vpop.permute.xlu0 %226  ;;  %v264_v24 = vpop.permute.xlu1 %263 }
  0x99   : > { %230 = vst.msk [vmem:[#allocation2 + $0x8] sm:$0x7] %vm229_vm6, %v227_v23  ;;  %vm375_vm6 = vcmp.lt.s32.totalorder %v1145_v43, 126 }
  0x9a   : > { %267 = vst.msk [vmem:[#allocation2 + $0x10] sm:$0x7] %vm266_vm7, %v264_v24  ;;  %vm418_vm7 = vcmp.lt.s32.totalorder %v1145_v43, 106 }
  0x9c   : > { %v183_v25 = vpop.permute.xlu0 %182  ;;  %v234_v26 = vpop.permute.xlu1 %233 }
  0x9d   : > { %186 = vst.msk [vmem:[#allocation2] sm:$0x7] %vm185_vm8, %v183_v25  ;;  %vm433_vm8 = vcmp.lt.s32.totalorder %v1145_v43, 88 }
  0x9e   : > { %237 = vst.msk [vmem:[#allocation2 + $0x8] sm:$0x7] %vm236_vm9, %v234_v26  ;;  %vm448_vm9 = vcmp.lt.s32.totalorder %v1145_v43, 87 }
  0xa0   : > { %v271_v27 = vpop.permute.xlu0 %270  ;;  %v190_v28 = vpop.permute.xlu1 %189 }
  0xa1   : > { %274 = vst.msk [vmem:[#allocation2 + $0x10] sm:$0x7] %vm273_vm10, %v271_v27  ;;  %vm463_vm10 = vcmp.lt.s32.totalorder %v1145_v43, 86 }
  0xa2   : > { %193 = vst.msk [vmem:[#allocation2] sm:$0x7] %vm192_vm11, %v190_v28  ;;  %vm504_vm11 = vcmask 588800  }
  0xa4   : > { %v241_v29 = vpop.permute.xlu0 %240  ;;  %v278_v30 = vpop.permute.xlu1 %277 }
  0xa5   : > { %244 = vst.msk [vmem:[#allocation2 + $0x8] sm:$0x7] %vm243_vm12, %v241_v29 }
  0xa6   : > { %281 = vst.msk [vmem:[#allocation2 + $0x10] sm:$0x7] %vm280_vm13, %v278_v30 }
  0xa7   : > { %251 = vst.msk [vmem:[#allocation2 + $0x8] sm:$0x7] %vm250_vm14, %v248_v18  ;;  %v498_v18 = vld [vmem:[%s1298_s2] sm:$0xff] }
  0xa8   : > { %v197_v31 = vpop.permute.xlu0 %196  ;;  %v285_v32 = vpop.permute.xlu1 %284 }
  0xa9   : > { %200 = vst.msk [vmem:[#allocation2] sm:$0x7] %vm199_vm15, %v197_v31 }
  0xaa   : > { %288 = vst.msk [vmem:[#allocation2 + $0x10] sm:$0x7] %vm287_vm0, %v285_v32 }
  0xab   : > { %207 = vst.msk [vmem:[#allocation2] sm:$0x7] %vm206_vm1, %v204_v17  ;;  %v1032_v17 = vmov 0  }
  0xac   : > { %v300_v36 = vpop.permute.xlu0 %299  ;;  %941 = vset.pattern.permute.xlu0 %v1032_v17 }
  0xae   : > { %v290_v33 = vld [vmem:[#allocation2 + $0x8] sm:$0xff] }
  0xaf   : > { %295 = vrot.lane.b32.xlu0 %v290_v33, %s1023_s27 }
  0xb0   : > { %v319_v37 = vpop.permute.xlu0 %318 }
  0xb1   : > { %v291_v35 = vld [vmem:[#allocation2 + $0x10] sm:$0xff] }
  0xb2   : > { %v289_v34 = vld [vmem:[#allocation2] sm:$0xff] }
  0xb3   : > { %314 = vrot.lane.b32.xlu0 %v290_v33, %s1024_s29  ;;  %293 = vrot.lane.b32.xlu1 %v289_v34, %s1023_s27 }
  0xb7   : > { %331 = vrot.lane.b32.xlu0 %v290_v33, %s1025_s28  ;;  %312 = vrot.lane.b32.xlu1 %v289_v34, %s1024_s29 }
  0xbb   : > { %297 = vrot.lane.b32.xlu1 %v291_v35, %s1023_s27  ;;  %335 = vrot.lane.b32.xlu0 %v1006_v0, %s1025_s28 }
  0xbf   : > { %316 = vrot.lane.b32.xlu1 %v291_v35, %s1024_s29 }
  0xc3   : > { %333 = vrot.lane.b32.xlu1 %v291_v35, %s1025_s28 }
  0xc7   : > { %329 = vrot.lane.b32.xlu1 %v289_v34, %s1025_s28 }
 0x121   : > { %v296_v38 = vpop.permute.xlu0 %295 }
 0x125   : > { %v294_v39 = vpop.permute.xlu1 %293  ;;  %v315_v41 = vpop.permute.xlu0 %314 }
 0x126   : > { %v306_v49 = vsel %vm303_vm2, %v294_v39, %v296_v38  ;;  %v307_v55 = vsel %vm303_vm2, %v300_v36, %v294_v39 }
 0x127   : > { %v308_v56 = vadd.f32 %v306_v49, %v289_v34 }
 0x129   : > { %v313_v42 = vpop.permute.xlu1 %312  ;;  %v332_v45 = vpop.permute.xlu0 %331 }
 0x12a   : > { %v323_v60 = vsel %vm320_vm3, %v313_v42, %v315_v41  ;;  %v324_v61 = vsel %vm320_vm3, %v319_v37, %v313_v42 }
 0x12b   : > { %v325_v4 = vadd.f32 %v323_v60, %v308_v56  ;;  %v328_v5 = vadd.f32 %v324_v61, %v307_v55 }
 0x12d   : > { %v298_v44 = vpop.permute.xlu1 %297  ;;  %v336_v54 = vpop.permute.xlu0 %335 }
 0x12e   : > { %v304_v46 = vsel %vm303_vm2, %v298_v44, %v300_v36  ;;  %v305_v47 = vsel %vm303_vm2, %v296_v38, %v298_v44 }
 0x12f   : > { %v309_v52 = vadd.f32 %v305_v47, %v290_v33  ;;  %v310_v53 = vadd.f32 %v304_v46, %v291_v35 }
 0x131   : > { %v317_v48 = vpop.permute.xlu1 %316 }
 0x132   : > { %v321_v50 = vsel %vm320_vm3, %v317_v48, %v319_v37  ;;  %v322_v51 = vsel %vm320_vm3, %v315_v41, %v317_v48 }
 0x133   : > { %v326_v57 = vadd.f32 %v322_v51, %v309_v52  ;;  %v327_v58 = vadd.f32 %v321_v50, %v310_v53 }
 0x135   : > { %v334_v59 = vpop.permute.xlu1 %333 }
 0x136   : > { %v338_v62 = vsel %vm337_vm4, %v334_v59, %v336_v54  ;;  %v339_v63 = vsel %vm337_vm4, %v332_v45, %v334_v59 }
 0x137   : > { %v343_v1 = vadd.f32 %v339_v63, %v326_v57  ;;  %v344_v2 = vadd.f32 %v338_v62, %v327_v58 }
 0x139   : > { %v347_v6 = vmul.f32 0.25, %v343_v1  ;;  %v348_v7 = vmul.f32 0.25, %v344_v2  ;;  %v330_v8 = vpop.permute.xlu1 %329 }
 0x13a   : > { %v340_v9 = vsel %vm337_vm4, %v330_v8, %v332_v45  ;;  %v341_v10 = vsel %vm337_vm4, %v336_v54, %v330_v8 }
 0x13b   : > { %v342_v11 = vadd.f32 %v340_v9, %v325_v4  ;;  %v345_v12 = vadd.f32 %v341_v10, %v328_v5  ;;  %v871_v13 = vpack.i.bf16 %v348_v7, %v347_v6 }
 0x13d   : > { %v346_v14 = vmul.f32 0.25, %v342_v11  ;;  %v349_v15 = vmul.f32 0.25, %v345_v12  ;;  %872 = vrot.lane.b32.xlu0 %v871_v13, %s1023_s27 }
 0x13f   : > { %v876_v16 = vpack.i.bf16 %v349_v15, %v346_v14 }
 0x141   : > { %882 = vrot.lane.b32.xlu0 %v871_v13, %s1027_s30  ;;  %877 = vrot.lane.b32.xlu1 %v876_v16, %s1023_s27  ;;  %s1254_s27 = scalar_lea.hbm %s1299_s3, %s804_s19 }
 0x145   : > { %892 = vrot.lane.b32.xlu0 %v876_v16, %s1027_s30  ;;  %887 = vrot.lane.b32.xlu1 %v871_v13, %s1024_s29 }
 0x149   : > { %902 = vrot.lane.b32.xlu0 %v871_v13, %s1025_s28  ;;  %897 = vrot.lane.b32.xlu1 %v876_v16, %s1024_s29  ;;  %s942_s29 = scalar_lea.vmem %s1256_s24, 384 }
 0x14a   : > { %p943_p11 = scmp.ne.s32.totalorder %s1256_s24, %s942_s29 }
 0x14c   : > { %p944_p12 = pnand %p943_p11, %p1092_p5 }
 0x14d   : > { %912 = vrot.lane.b32.xlu0 %v876_v16, %s1025_s28  ;;  %907 = vrot.lane.b32.xlu1 %v871_v13, %s1028_s4  ;;  %s1033_s28 = smov [#allocation4]  }
 0x14e   : > { %p945_p13 = pneg %p944_p12  ;;  %s946_s30 = sshll.u32 %s1033_s28, 4  ;;  %s947_s30 = int_to_ptr.vmem [resolvable:$false] %s946_s30 }
 0x14f   : > { %p949_p0 = scmp.lt.s32.totalorder %s1256_s24, %s947_s30 }
 0x151   : > { %922 = vrot.lane.b32.xlu0 %v871_v13, %s1029_s5  ;;  %917 = vrot.lane.b32.xlu1 %v876_v16, %s1028_s4  ;;  %s948_s4 = scalar_lea.vmem %s947_s30, 768 }
 0x152   : > { %p950_p1 = scmp.lt.s32.totalorder %s948_s4, %s942_s29 }
 0x154   : > { %p951_p2 = por %p950_p1, %p949_p0 }
 0x155   : > { %932 = vrot.lane.b32.xlu0 %v876_v16, %s1029_s5  ;;  %927 = vrot.lane.b32.xlu1 %v871_v13, %s1030_s7 }
 0x156   : > { %p952_p3 = pnand %p951_p2, %p945_p13 }
 0x159   : > { %457 = vrot.lane.b32.xlu0 %v347_v6, %s1011_s6  ;;  %937 = vrot.lane.b32.xlu1 %v876_v16, %s1030_s7 }
 0x15d   : > { %455 = vrot.lane.b32.xlu0 %v346_v14, %s1011_s6  ;;  %459 = vrot.lane.b32.xlu1 %v348_v7, %s1011_s6 }
 0x161   : > { %461 = vrot.lane.b32.xlu1 %v349_v15, %s1011_s6  ;;  %501 = vperm.xlu0 %941, %v498_v18  }
 0x1af   : > { %v873_v19 = vpop.permute.xlu0 %872 }
 0x1b0   : > { %v875_v20 = vunpack.i.h.bf16 %v873_v19  ;;  %v874_v21 = vunpack.i.l.bf16 %v873_v19 }
 0x1b2   : > { %v362_v22 = vsel %vm303_vm2, %v874_v21, %v875_v20 }
 0x1b3   : > { %v883_v23 = vpop.permute.xlu0 %882  ;;  %v878_v24 = vpop.permute.xlu1 %877  ;;  %v775_v25 = vpack.c.bf16 %v362_v22, %v347_v6 }
 0x1b4   : > { %v880_v26 = vunpack.i.h.bf16 %v878_v24  ;;  %v879_v27 = vunpack.i.l.bf16 %v878_v24  ;;  %v885_v28 = vunpack.i.h.bf16 %v883_v23  ;;  %v884_v29 = vunpack.i.l.bf16 %v883_v23 }
 0x1b5   : > { %776 = vmatprep.subr.bf16.mxu0 %v775_v25 }
 0x1b6   : > { %v363_v30 = vsel %vm303_vm2, %v879_v27, %v874_v21  ;;  %v361_v31 = vsel %vm303_vm2, %v875_v20, %v880_v26  ;;  %v377_v40 = vsel %vm375_vm6, %v884_v29, %v885_v28 }
 0x1b7   : > { %v893_v32 = vpop.permute.xlu0 %892  ;;  %v888_v33 = vpop.permute.xlu1 %887  ;;  %v777_v34 = vpack.c.bf16 %v363_v30, %v346_v14  ;;  %v792_v35 = vpack.c.bf16 %v361_v31, %v348_v7 }
 0x1b8   : > { %v890_v36 = vunpack.i.h.bf16 %v888_v33  ;;  %v889_v37 = vunpack.i.l.bf16 %v888_v33  ;;  %v895_v38 = vunpack.i.h.bf16 %v893_v32  ;;  %v894_v39 = vunpack.i.l.bf16 %v893_v32 }
 0x1b9   : > { %778 = vmatpush1.bf16.msra.mxu0 %v777_v34  ;;  %793 = vmatpush3.bf16.msra.mxu1 %v792_v35 }
 0x1ba   : > { %v391_v41 = vsel %vm320_vm3, %v889_v37, %v890_v36  ;;  %794 = vmatprep.subr.bf16.mxu1 %v1026_v3  ;;  %v378_v48 = vsel %vm375_vm6, %v894_v39, %v884_v29  ;;  %v376_v49 = vsel %vm375_vm6, %v885_v28, %v895_v38 }
 0x1bb   : > { %v903_v42 = vpop.permute.xlu0 %902  ;;  %v898_v44 = vpop.permute.xlu1 %897  ;;  %v779_v45 = vpack.c.bf16 %v391_v41, %v377_v40 }
 0x1bc   : > { %v900_v46 = vunpack.i.h.bf16 %v898_v44  ;;  %v899_v47 = vunpack.i.l.bf16 %v898_v44  ;;  %v905_v50 = vunpack.i.h.bf16 %v903_v42  ;;  %v904_v51 = vunpack.i.l.bf16 %v903_v42 }
 0x1bd   : > { %780 = vmatprep.subr.bf16.mxu0 %v779_v45 }
 0x1be   : > { %v392_v52 = vsel %vm320_vm3, %v899_v47, %v889_v37  ;;  %v390_v53 = vsel %vm320_vm3, %v890_v36, %v900_v46  ;;  %v405_v62 = vsel %vm337_vm4, %v904_v51, %v905_v50  ;;  %v470_v37 = vld [vmem:[%s1297_s1] sm:$0xff] }
 0x1bf   : > { %v913_v54 = vpop.permute.xlu0 %912  ;;  %v908_v55 = vpop.permute.xlu1 %907  ;;  %v781_v56 = vpack.c.bf16 %v392_v52, %v378_v48  ;;  %v795_v57 = vpack.c.bf16 %v390_v53, %v376_v49 }
 0x1c0   : > { %v910_v58 = vunpack.i.h.bf16 %v908_v55  ;;  %v909_v59 = vunpack.i.l.bf16 %v908_v55  ;;  %v915_v60 = vunpack.i.h.bf16 %v913_v54  ;;  %v914_v61 = vunpack.i.l.bf16 %v913_v54 }
 0x1c1   : > { %782 = vmatpush1.bf16.msra.mxu0 %v781_v56  ;;  %796 = vmatpush3.bf16.msra.mxu1 %v795_v57 }
 0x1c2   : > { %v420_v63 = vsel %vm418_vm7, %v909_v59, %v910_v58  ;;  %797 = vmatprep.subr.bf16.mxu1 %v1026_v3  ;;  %v406_v7 = vsel %vm337_vm4, %v914_v61, %v904_v51  ;;  %v404_v8 = vsel %vm337_vm4, %v905_v50, %v915_v60 }
 0x1c3   : > { %v923_v1 = vpop.permute.xlu0 %922  ;;  %v918_v2 = vpop.permute.xlu1 %917  ;;  %v783_v4 = vpack.c.bf16 %v420_v63, %v405_v62 }
 0x1c4   : > { %v920_v5 = vunpack.i.h.bf16 %v918_v2  ;;  %v919_v6 = vunpack.i.l.bf16 %v918_v2  ;;  %v925_v9 = vunpack.i.h.bf16 %v923_v1  ;;  %v924_v10 = vunpack.i.l.bf16 %v923_v1 }
 0x1c5   : > { %784 = vmatprep.subr.bf16.mxu0 %v783_v4 }
 0x1c6   : > { %v421_v11 = vsel %vm418_vm7, %v919_v6, %v909_v59  ;;  %v419_v12 = vsel %vm418_vm7, %v910_v58, %v920_v5  ;;  %v435_v21 = vsel %vm433_vm8, %v924_v10, %v925_v9 }
 0x1c7   : > { %v933_v13 = vpop.permute.xlu0 %932  ;;  %v928_v14 = vpop.permute.xlu1 %927  ;;  %v785_v15 = vpack.c.bf16 %v421_v11, %v406_v7  ;;  %v798_v16 = vpack.c.bf16 %v419_v12, %v404_v8 }
 0x1c8   : > { %v930_v17 = vunpack.i.h.bf16 %v928_v14  ;;  %v929_v18 = vunpack.i.l.bf16 %v928_v14  ;;  %v935_v19 = vunpack.i.h.bf16 %v933_v13  ;;  %v934_v20 = vunpack.i.l.bf16 %v933_v13 }
 0x1c9   : > { %786 = vmatpush1.bf16.msra.mxu0 %v785_v15  ;;  %799 = vmatpush3.bf16.msra.mxu1 %v798_v16 }
 0x1ca   : > { %v450_v22 = vsel %vm448_vm9, %v929_v18, %v930_v17  ;;  %800 = vmatprep.subr.bf16.mxu1 %v1026_v3  ;;  %v436_v28 = vsel %vm433_vm8, %v934_v20, %v924_v10  ;;  %v434_v30 = vsel %vm433_vm8, %v925_v9, %v935_v19 }
 0x1cb   : > { %v458_v23 = vpop.permute.xlu0 %457  ;;  %v938_v24 = vpop.permute.xlu1 %937  ;;  %v787_v25 = vpack.c.bf16 %v450_v22, %v435_v21 }
 0x1cc   : > { %v940_v26 = vunpack.i.h.bf16 %v938_v24  ;;  %v939_v27 = vunpack.i.l.bf16 %v938_v24 }
 0x1cd   : > { %788 = vmatprep.subr.bf16.mxu0 %v787_v25 }
 0x1ce   : > { %v451_v29 = vsel %vm448_vm9, %v939_v27, %v929_v18  ;;  %v449_v3 = vsel %vm448_vm9, %v930_v17, %v940_v26 }
 0x1cf   : > { %v460_v31 = vpop.permute.xlu1 %459  ;;  %v789_v32 = vpack.c.bf16 %v451_v29, %v436_v28  ;;  %v801_v33 = vpack.c.bf16 %v449_v3, %v434_v30  ;;  %v456_v35 = vpop.permute.xlu0 %455 }
 0x1d0   : > { %v465_v34 = vsel %vm463_vm10, %v458_v23, %v460_v31  ;;  %v466_v38 = vsel %vm463_vm10, %v456_v35, %v458_v23 }
 0x1d1   : > { %790 = vmatpush1.bf16.msra.mxu0 %v789_v32  ;;  %802 = vmatpush3.bf16.msra.mxu1 %v801_v33 }
 0x1d2   : > { %524 = vmatprep.subr.mxu0 %v465_v34  ;;  %770 = vmatprep.subr.mxu1 %v1006_v0 }
 0x1d3   : > { %v462_v36 = vpop.permute.xlu1 %461 }
 0x1d4   : > { %v464_v39 = vsel %vm463_vm10, %v460_v31, %v462_v36 }
 0x1d5   : > { %525 = vmatpush1.msra.mxu0 %v466_v38  ;;  %771 = vmatpush3.msra.mxu1 %v464_v39 }
 0x1d6   : > { %738 = vmatmul.mubr.msk.f32.vlgmr.msra.gmra.mrb[0].mxu0 %vm504_vm11, %v470_v37  ;;  %773 = vmatmul.mubr.msk.f32.vlgmr.msra.gmra.mrb[0].mxu1 %vm504_vm11, %v470_v37 }
 0x1e0   : > { %v502_v0 = vpop.permute.xlu0 %501 }
 0x2a9   : > { %v574_v40 = vpop.f32.mrb[0].mxu0  ;;  %v645_v41 = vpop.f32.mrb[0].mxu1 }
 0x2aa   : > { %v575_v42 = vadd.f32 %v574_v40, %v502_v0  ;;  %v646_v44 = vadd.f32 %v645_v41, %v502_v0  ;;  %v576_v45 = vpop.f32.mrb[1].mxu0  ;;  %v774_v46 = vpop.f32.mrb[1].mxu1 }
 0x2ab   : > { %v577_v47 = vadd.f32 %v576_v45, %v502_v0 }
 0x2ac   : > { %v649_v48 = vmax.f32 %v575_v42, 0.0  ;;  %v651_v43 = vmax.f32 %v646_v44, 0.0 }
 0x2ad   : > { %v650_v49 = vmax.f32 %v577_v47, 0.0 }
 0x2ae   : > { %v652_v50 = vmin.f32 %v649_v48, 6.4  ;;  %v654_v51 = vmin.f32 %v651_v43, 6.4 }
 0x2af   : > { %v653_v52 = vmin.f32 %v650_v49, 6.4 }
 0x2b0   : > { %655 = vst [vmem:[%s163_s20] sm:$0xff] %v652_v50  ;;  %657 = vst [vmem:[%s163_s20 + $0x10] sm:$0xff] %v654_v51 }
 0x2b1   : > { %656 = vst [vmem:[%s163_s20 + $0x8] sm:$0xff] %v653_v52 }
 0x2b2   : > { %955 = shalt.err (!%p952_p3)
}
 0x2b3   : > { %s956_s5 = scalar_lea.hbm %s1254_s27, 384  ;;  %s960_s9 = scalar_lea.hbm %s1299_s3, 768 }
 0x2b4   : > { %p957_p4 = scmp.ne.s32.totalorder %s1254_s27, %s956_s5  ;;  %p961_p9 = scmp.lt.u32.totalorder %s1254_s27, %s1299_s3 }
 0x2b5   : > { %p962_p10 = scmp.lt.u32.totalorder %s960_s9, %s956_s5  ;;  %p964_p12 = scmp.lt.u32.totalorder %s956_s5, %s1254_s27 }
 0x2b6   : > { %p958_p7 = pnand %p957_p4, %p1092_p5 }
 0x2b7   : > { %p963_p11 = por %p962_p10, %p961_p9 }
 0x2b8   : > { %p959_p8 = pneg %p958_p7 }
 0x2b9   : > { %p965_p13 = por %p964_p12, %p963_p11 }
 0x2bb   : > { %p966_p0 = pnand %p965_p13, %p959_p8 }
 0x2bd   : > { %969 = shalt.err (!%p966_p0)
}
 0x2be   : > { %805 = dma.vmem_to_hbm [thread:$0]  (%p1092_p5), %s1256_s24, 384, %s1254_s27, %s659_s16  }
 0x2bf PF: > { %p811_p1 = scmp.ge.s32.totalorder %s1004_s15, 2  ;;  %s685_s11 = sand.u32 1, %s992_s12  }
 0x2c0   : > { %s686_s17 = scalar_lea.sflag [#allocation5], %s685_s11 }
 0x2c1   : > { %p808_p2 = pnand %p811_p1, %p1096_p6 }
 0x2c3   : > { %987 = dma.done.wait (!%p808_p2), %s686_s17, 384  }
 0x2c4   : > { %989 = vsyncadd (!%p808_p2), %s686_s17, 4294966912  ;;  %p13_p3 = scmp.ge.s32.totalorder %s1079_s18, 4   ;;  %s1302_s12 = smov %s996_s13 }
 0x2c5   : > { %s1303_s13 = smov %s1000_s14  ;;  %s1304_s14 = smov %s1090_s21 }
 0x2c6   : > { %s1305_s15 = smov %s1079_s18  ;;  %15 = sbr.rel (!%p13_p3) target bundleno = 3 (0x3), region = 67 }
 0x2cd   :  { %691 = vsyncpa [#allocation5], 1 }
 0x2ce   :  { %693 = vsyncpa [#allocation5 + $0x1], 1 }

</bundles_post_ra>
